<compile_context>
chip_gen: v7x
topology: tpu7x:2x2x1
jax: 0.10.0
libtpu: 0.0.40
codegen_flags: <defaults>
</compile_context>

<pallas_src>
import functools

import jax
import jax.numpy as jnp
from jax.experimental import pallas as pl
from jax.experimental.pallas import tpu as pltpu


def _gelu_tanh(h):
    # Matches the torch.jit.script `gelu` exactly (tanh approximation).
    return h * 0.5 * (1.0 + jnp.tanh(0.79788456 * h * (1.0 + 0.044715 * h * h)))


def mlp_kernel(x_ref, w1_ref, b1_ref, w2_ref, b2_ref, o_ref, acc_ref):
    # x_ref:  (tm, H)   tile of input rows           (f-invariant, no re-DMA)
    # w1_ref: (H, tf)   slab of dense_h_to_4h weight (in x out layout)
    # b1_ref: (1, tf)
    # w2_ref: (tf, H)   slab of dense_4h_to_h weight (in x out layout)
    # b2_ref: (1, H)
    # o_ref:  (tm, H)   output tile (written only on the last FF step)
    # acc_ref:(tm, H)   float32 accumulator, resident across the FF axis
    f = pl.program_id(1)
    last = pl.num_programs(1) - 1

    # First matmul on the MXU, f32 accumulation; no weight/input upcast.
    h = jnp.dot(x_ref[...], w1_ref[...], preferred_element_type=jnp.float32)
    h = _gelu_tanh(h + b1_ref[...].astype(jnp.float32))

    # Second matmul: cast the f32 intermediate to the weight dtype for the MXU
    # (no-op when weights are f32), accumulate in f32.
    partial = jnp.dot(h.astype(w2_ref.dtype), w2_ref[...],
                      preferred_element_type=jnp.float32)

    @pl.when(f == 0)
    def _():
        # Assign on the first step: saves a full zero-init write + read.
        acc_ref[...] = partial

    @pl.when(f > 0)
    def _():
        acc_ref[...] += partial

    @pl.when(f == last)
    def _():
        out = acc_ref[...] + b2_ref[...].astype(jnp.float32)
        o_ref[...] = out.astype(o_ref.dtype)


def _round_up(x, m):
    return ((x + m - 1) // m) * m


def _sublane_multiple(dtype):
    # Sublane packing: 8 rows for 4-byte, 16 for 2-byte, 32 for 1-byte dtypes.
    return {4: 8, 2: 16, 1: 32}.get(jnp.dtype(dtype).itemsize, 8)


def _vmem_budget_bytes():
    """~80% of physical VMEM: ≈102 MiB on v5e/v6e (128 MiB), ≈51 MiB on v7x (64 MiB)."""
    phys = 64 * 1024 * 1024  # conservative default if the query fails
    try:
        info = pltpu.get_tpu_info()
        cap = getattr(info, "vmem_capacity_bytes", None)
        if cap:
            phys = int(cap)
    except Exception:
        pass
    return max(32 * 1024 * 1024, (phys * 4) // 5)


def _pick_tf(ff_dim, desired):
    """Largest FF tile <= desired dividing FF; prefer multiples of 256, then 128."""
    if ff_dim <= desired:
        return ff_dim
    for step in (256, 128):
        cand = (desired // step) * step
        while cand >= step:
            if ff_dim % cand == 0:
                return cand
            cand -= step
    # Pathological FF (no 128-multiple divisor): keep full FF resident.
    return ff_dim


def _vmem_usage_bytes(tm, tf, H, x_isz, w_isz):
    x_tile = 2 * tm * H * x_isz          # double-buffered input rows
    out_tile = 2 * tm * H * x_isz        # double-buffered output rows
    w1_slab = 2 * H * tf * w_isz         # double-buffered W1 slab
    w2_slab = 2 * tf * H * w_isz         # double-buffered W2 slab
    biases = 2 * (tf + H) * w_isz
    acc = tm * H * 4                     # f32 scratch accumulator
    h_tmp = 2 * tm * tf * 4              # f32 intermediate h + gelu temps
    return x_tile + out_tile + w1_slab + w2_slab + biases + acc + h_tmp


def _choose_tiles(M, H, FF, x_dtype, w_dtype, budget):
    x_isz = jnp.dtype(x_dtype).itemsize
    w_isz = jnp.dtype(w_dtype).itemsize
    sub = _sublane_multiple(x_dtype)

    # tm is the only knob that amortizes weight streaming: target 1024 for
    # bf16-class dtypes, 512 for f32 (per-roofline arithmetic intensity).
    desired_tm = 1024 if max(x_isz, w_isz) <= 2 else 512
    M_aligned = _round_up(M, sub)
    tm = min(desired_tm, M_aligned)
    if tm >= 256:
        tm = (tm // 256) * 256          # fill the 256-wide MXU on v6e/v7x
    elif tm >= 128:
        tm = (tm // 128) * 128
    else:
        tm = _round_up(tm, sub)

    tf = _pick_tf(FF, 512)

    # Shrink until the plan fits in the VMEM budget (with slack for compiler
    # scratch).  Shrink tf first (does not change HBM weight traffic), tm last
    # (halving tm doubles weight re-streaming).
    slack = 4 * 1024 * 1024
    while _vmem_usage_bytes(tm, tf, H, x_isz, w_isz) + slack > budget:
        if tf > 128 and tf % 2 == 0 and FF % (tf // 2) == 0:
            tf //= 2
        elif tm > 128:
            tm = max(128, tm // 2)
        else:
            break
    return tm, tf


@functools.partial(jax.jit, static_argnames=("tm", "tf", "vmem_limit"))
def _mlp_forward_impl(x, w1, b1, w2, b2, *, tm, tf, vmem_limit):
    B, S, H = x.shape
    FF = w1.shape[1]
    M = B * S
    M_pad = _round_up(M, tm)
    n_row_tiles = M_pad // tm

    x2 = x.reshape(M, H)
    if M_pad != M:
        x2 = jnp.pad(x2, ((0, M_pad - M), (0, 0)))
    b1r = b1.reshape(1, FF)
    b2r = b2.reshape(1, H)

    x_itemsize = jnp.dtype(x.dtype).itemsize
    w_itemsize = jnp.dtype(w1.dtype).itemsize
    cost = pl.CostEstimate(
        flops=4 * M_pad * H * FF,                      # two matmuls
        transcendentals=M_pad * FF,                    # tanh per intermediate elem
        bytes_accessed=(M_pad * H * x_itemsize * 2     # x in + out
                        # weights + biases are re-streamed once per row tile
                        + n_row_tiles * (H * FF * w_itemsize * 2
                                         + FF * w_itemsize
                                         + H * w_itemsize)),
    )

    out = pl.pallas_call(
        mlp_kernel,
        out_shape=jax.ShapeDtypeStruct((M_pad, H), x.dtype),
        grid_spec=pltpu.PrefetchScalarGridSpec(
            num_scalar_prefetch=0,
            grid=(n_row_tiles, FF // tf),
            in_specs=[
                pl.BlockSpec((tm, H), lambda i, f: (i, 0)),   # x rows (f-invariant)
                pl.BlockSpec((H, tf), lambda i, f: (0, f)),   # W1 slab
                pl.BlockSpec((1, tf), lambda i, f: (0, f)),   # b1 slab
                pl.BlockSpec((tf, H), lambda i, f: (f, 0)),   # W2 slab
                pl.BlockSpec((1, H), lambda i, f: (0, 0)),    # b2
            ],
            out_specs=pl.BlockSpec((tm, H), lambda i, f: (i, 0)),
            scratch_shapes=[pltpu.VMEM((tm, H), jnp.float32)],
        ),
        compiler_params=pltpu.CompilerParams(
            dimension_semantics=("parallel", "arbitrary"),
            vmem_limit_bytes=vmem_limit,
        ),
        cost_estimate=cost,
    )(x2, w1, b1r, w2, b2r)

    if M_pad != M:
        out = out[:M]
    return out.reshape(B, S, H)


def mlp_forward(x, w1, b1, w2, b2, *, tm=None, tf=None, mxu_bf16=False):
    """x: (batch, seq, hidden). Weights stored (in_features, out_features).

    mxu_bf16=True feeds bf16 operands to the MXU when params are f32 (faster,
    halves weight HBM bytes) — a numerics tradeoff vs the f32 reference.
    """
    B, S, H = x.shape
    FF = w1.shape[1]
    M = B * S

    out_dtype = x.dtype
    if mxu_bf16 and jnp.dtype(w1.dtype) == jnp.dtype(jnp.float32):
        x = x.astype(jnp.bfloat16)
        w1 = w1.astype(jnp.bfloat16)
        w2 = w2.astype(jnp.bfloat16)

    budget = _vmem_budget_bytes()
    tm_auto, tf_auto = _choose_tiles(M, H, FF, x.dtype, w1.dtype, budget)
    tm_eff = tm if tm is not None else tm_auto
    tf_eff = tf if tf is not None else tf_auto
    # Clamp the row tile for tiny inputs (dtype-aware sublane packing).
    tm_eff = min(tm_eff, _round_up(M, _sublane_multiple(x.dtype)))

    out = _mlp_forward_impl(x, w1, b1, w2, b2,
                            tm=int(tm_eff), tf=int(tf_eff),
                            vmem_limit=int(budget))
    return out.astype(out_dtype)


def init_params(key, hidden_size, dtype=jnp.float32):
    """Deterministic init mimicking nn.Linear defaults (uniform +/- 1/sqrt(fan_in)).

    Weights are stored as (in_features, out_features), i.e. transposed vs torch.
    """
    ff_dim = 4 * hidden_size
    k1, k2, k3, k4 = jax.random.split(key, 4)
    bound1 = 1.0 / (hidden_size ** 0.5)
    bound2 = 1.0 / (ff_dim ** 0.5)
    w1 = jax.random.uniform(k1, (hidden_size, ff_dim), jnp.float32, -bound1, bound1)
    b1 = jax.random.uniform(k2, (ff_dim,), jnp.float32, -bound1, bound1)
    w2 = jax.random.uniform(k3, (ff_dim, hidden_size), jnp.float32, -bound2, bound2)
    b2 = jax.random.uniform(k4, (hidden_size,), jnp.float32, -bound2, bound2)
    return (w1.astype(dtype), b1.astype(dtype), w2.astype(dtype), b2.astype(dtype))


def mlp_reference(x, w1, b1, w2, b2):
    h = x.astype(jnp.float32) @ w1.astype(jnp.float32) + b1.astype(jnp.float32)
    h = _gelu_tanh(h)
    out = h @ w2.astype(jnp.float32) + b2.astype(jnp.float32)
    return out.astype(x.dtype)


if __name__ == "__main__":
    batch, seq, hidden = 2, 8, 32   # ff_dim = 128
    key = jax.random.PRNGKey(0)
    kx, kp = jax.random.split(key)

    x = jax.random.normal(kx, (batch, seq, hidden), jnp.float32)
    w1, b1, w2, b2 = init_params(kp, hidden)

    out = mlp_forward(x, w1, b1, w2, b2)
    out = jax.block_until_ready(out)

    ref = mlp_reference(x.reshape(-1, hidden), w1, b1, w2, b2).reshape(batch, seq, hidden)
    assert out.shape == (batch, seq, hidden)
    assert jnp.allclose(out, ref, atol=1e-4, rtol=1e-4), "mismatch vs reference"

    print("KERNEL_OK")
</pallas_src>

<mosaic_0001>
module attributes {stable_mosaic.version = 11 : i64} {
  func.func @mlp_kernel(%arg0: i32, %arg1: i32, %arg2: memref<16x32xf32, #tpu.memory_space<vmem>>, %arg3: memref<32x128xf32, #tpu.memory_space<vmem>>, %arg4: memref<1x128xf32, #tpu.memory_space<vmem>>, %arg5: memref<128x32xf32, #tpu.memory_space<vmem>>, %arg6: memref<1x32xf32, #tpu.memory_space<vmem>>, %arg7: memref<16x32xf32, #tpu.memory_space<vmem>>, %arg8: memref<16x32xf32, #tpu.memory_space<vmem>>) attributes {dimension_semantics = [#tpu.dimension_semantics<parallel>, #tpu.dimension_semantics<arbitrary>], iteration_bounds = array<i64: 1, 1>, scalar_prefetch = 0 : i64, scratch_operands = 1 : i64, tpu.core_type = #tpu.core_type<tc>, window_params = [{transform_indices = @transform_0, window_bounds = array<i64: 16, 32>}, {transform_indices = @transform_1, window_bounds = array<i64: 32, 128>}, {transform_indices = @transform_2, window_bounds = array<i64: 1, 128>}, {transform_indices = @transform_3, window_bounds = array<i64: 128, 32>}, {pipeline_mode = #tpu.pipeline_mode<synchronous>, transform_indices = @transform_4, window_bounds = array<i64: 1, 32>}, {transform_indices = @transform_5, window_bounds = array<i64: 16, 32>}]} {
    %c0 = arith.constant 0 : index
    %c0_0 = arith.constant 0 : index
    %0 = vector.load %arg2[%c0, %c0_0] : memref<16x32xf32, #tpu.memory_space<vmem>>, vector<16x32xf32>
    %c0_1 = arith.constant 0 : index
    %c0_2 = arith.constant 0 : index
    %1 = vector.load %arg3[%c0_1, %c0_2] : memref<32x128xf32, #tpu.memory_space<vmem>>, vector<32x128xf32>
    %cst = arith.constant dense<0.000000e+00> : vector<16x128xf32>
    %2 = tpu.matmul %0, %1, %cst {dimension_numbers = #tpu.dot_dimension_numbers<[1], [0], [0], [1], [0, 0, 1, 1], [], []>} : vector<16x32xf32>, vector<32x128xf32>, vector<16x128xf32> -> vector<16x128xf32>
    %c0_3 = arith.constant 0 : index
    %c0_4 = arith.constant 0 : index
    %3 = vector.load %arg4[%c0_3, %c0_4] : memref<1x128xf32, #tpu.memory_space<vmem>>, vector<1x128xf32>
    %4 = vector.broadcast %3 : vector<1x128xf32> to vector<16x128xf32>
    %5 = arith.addf %2, %4 : vector<16x128xf32>
    %cst_5 = arith.constant 5.000000e-01 : f32
    %6 = vector.broadcast %cst_5 : f32 to vector<16x128xf32>
    %7 = arith.mulf %5, %6 : vector<16x128xf32>
    %cst_6 = arith.constant 0.797884583 : f32
    %8 = vector.broadcast %cst_6 : f32 to vector<16x128xf32>
    %9 = arith.mulf %8, %5 : vector<16x128xf32>
    %cst_7 = arith.constant 4.471500e-02 : f32
    %10 = vector.broadcast %cst_7 : f32 to vector<16x128xf32>
    %11 = arith.mulf %10, %5 : vector<16x128xf32>
    %12 = arith.mulf %11, %5 : vector<16x128xf32>
    %cst_8 = arith.constant 1.000000e+00 : f32
    %13 = vector.broadcast %cst_8 : f32 to vector<16x128xf32>
    %14 = arith.addf %13, %12 : vector<16x128xf32>
    %15 = arith.mulf %9, %14 : vector<16x128xf32>
    %16 = math.tanh %15 : vector<16x128xf32>
    %cst_9 = arith.constant 1.000000e+00 : f32
    %17 = vector.broadcast %cst_9 : f32 to vector<16x128xf32>
    %18 = arith.addf %17, %16 : vector<16x128xf32>
    %19 = arith.mulf %7, %18 : vector<16x128xf32>
    %c0_10 = arith.constant 0 : index
    %c0_11 = arith.constant 0 : index
    %20 = vector.load %arg5[%c0_10, %c0_11] : memref<128x32xf32, #tpu.memory_space<vmem>>, vector<128x32xf32>
    %cst_12 = arith.constant dense<0.000000e+00> : vector<16x32xf32>
    %21 = tpu.matmul %19, %20, %cst_12 {dimension_numbers = #tpu.dot_dimension_numbers<[1], [0], [0], [1], [0, 0, 1, 1], [], []>} : vector<16x128xf32>, vector<128x32xf32>, vector<16x32xf32> -> vector<16x32xf32>
    %c0_i32 = arith.constant 0 : i32
    %22 = arith.cmpi eq, %arg1, %c0_i32 : i32
    %23 = arith.extui %22 : i1 to i32
    %c0_i32_13 = arith.constant 0 : i32
    %24 = arith.cmpi ne, %23, %c0_i32_13 : i32
    scf.if %24 {
      %c0_18 = arith.constant 0 : index
      %c0_19 = arith.constant 0 : index
      %31 = vector.load %arg8[%c0_18, %c0_19] : memref<16x32xf32, #tpu.memory_space<vmem>>, vector<16x32xf32>
      tpu.vector_store %arg8[%c0_18, %c0_19], %21 {strides = array<i32>} : memref<16x32xf32, #tpu.memory_space<vmem>>, vector<16x32xf32>,
    } else {
    }
    %c0_i32_14 = arith.constant 0 : i32
    %25 = arith.cmpi sgt, %arg1, %c0_i32_14 : i32
    %26 = arith.extui %25 : i1 to i32
    %c0_i32_15 = arith.constant 0 : i32
    %27 = arith.cmpi ne, %26, %c0_i32_15 : i32
    scf.if %27 {
      %c0_18 = arith.constant 0 : index
      %c0_19 = arith.constant 0 : index
      %31 = vector.load %arg8[%c0_18, %c0_19] : memref<16x32xf32, #tpu.memory_space<vmem>>, vector<16x32xf32>
      %32 = arith.addf %31, %21 : vector<16x32xf32>
      %c0_20 = arith.constant 0 : index
      %c0_21 = arith.constant 0 : index
      %33 = vector.load %arg8[%c0_20, %c0_21] : memref<16x32xf32, #tpu.memory_space<vmem>>, vector<16x32xf32>
      tpu.vector_store %arg8[%c0_20, %c0_21], %32 {strides = array<i32>} : memref<16x32xf32, #tpu.memory_space<vmem>>, vector<16x32xf32>,
    } else {
    }
    %c0_i32_16 = arith.constant 0 : i32
    %28 = arith.cmpi eq, %arg1, %c0_i32_16 : i32
    %29 = arith.extui %28 : i1 to i32
    %c0_i32_17 = arith.constant 0 : i32
    %30 = arith.cmpi ne, %29, %c0_i32_17 : i32
    scf.if %30 {
      %c0_18 = arith.constant 0 : index
      %c0_19 = arith.constant 0 : index
      %31 = vector.load %arg8[%c0_18, %c0_19] : memref<16x32xf32, #tpu.memory_space<vmem>>, vector<16x32xf32>
      %c0_20 = arith.constant 0 : index
      %c0_21 = arith.constant 0 : index
      %32 = vector.load %arg6[%c0_20, %c0_21] : memref<1x32xf32, #tpu.memory_space<vmem>>, vector<1x32xf32>
      %33 = vector.broadcast %32 : vector<1x32xf32> to vector<16x32xf32>
      %34 = arith.addf %31, %33 : vector<16x32xf32>
      %c0_22 = arith.constant 0 : index
      %c0_23 = arith.constant 0 : index
      %35 = vector.load %arg7[%c0_22, %c0_23] : memref<16x32xf32, #tpu.memory_space<vmem>>, vector<16x32xf32>
      tpu.vector_store %arg7[%c0_22, %c0_23], %34 {strides = array<i32>} : memref<16x32xf32, #tpu.memory_space<vmem>>, vector<16x32xf32>,
    } else {
    }
    return
  }
  func.func @transform_0(%arg0: i32, %arg1: i32) -> (i32, i32) {
    %c0_i32 = arith.constant 0 : i32
    %c0_i32_0 = arith.constant 0 : i32
    return %arg0, %c0_i32 : i32, i32
  }
  func.func @transform_1(%arg0: i32, %arg1: i32) -> (i32, i32) {
    %c0_i32 = arith.constant 0 : i32
    %c0_i32_0 = arith.constant 0 : i32
    return %c0_i32, %arg1 : i32, i32
  }
  func.func @transform_2(%arg0: i32, %arg1: i32) -> (i32, i32) {
    %c0_i32 = arith.constant 0 : i32
    %c0_i32_0 = arith.constant 0 : i32
    return %c0_i32, %arg1 : i32, i32
  }
  func.func @transform_3(%arg0: i32, %arg1: i32) -> (i32, i32) {
    %c0_i32 = arith.constant 0 : i32
    %c0_i32_0 = arith.constant 0 : i32
    return %arg1, %c0_i32 : i32, i32
  }
  func.func @transform_4(%arg0: i32, %arg1: i32) -> (i32, i32) {
    %c0_i32 = arith.constant 0 : i32
    %c0_i32_0 = arith.constant 0 : i32
    %c0_i32_1 = arith.constant 0 : i32
    return %c0_i32, %c0_i32_0 : i32, i32
  }
  func.func @transform_5(%arg0: i32, %arg1: i32) -> (i32, i32) {
    %c0_i32 = arith.constant 0 : i32
    %c0_i32_0 = arith.constant 0 : i32
    return %arg0, %c0_i32 : i32, i32
  }
}

</mosaic_0001>

<bundles_post_ra>
// kernel: _mlp_forward_impl.1
= control target key start
LH: loop header
LB: loop body
LE: loop exit
PB: predicated region body
PF: predicated region fallthrough
CT: control target
= control target key end

     0   :  { %vm34_vm0 = vcmask 261120   ;;  %s541_s0 = inlined_call_operand.vmem [shape: f32[16,32], index: 0, kind: input, shape index: {}]   ;;  %s542_s1 = inlined_call_operand.vmem [shape: f32[32,128], index: 1, kind: input, shape index: {}]   ;;  %s543_s2 = inlined_call_operand.vmem [shape: f32[1,128], index: 2, kind: input, shape index: {}]   ;;  %s544_s3 = inlined_call_operand.vmem [shape: f32[128,32], index: 3, kind: input, shape index: {}]   ;;  %s545_s4 = inlined_call_operand.vmem [shape: f32[1,32], index: 4, kind: input, shape index: {}]   ;;  %s546_s5 = inlined_call_operand.hbm [shape: f32[16,32], index: 5, kind: output, shape index: {}]  }
   0x1   :  { %v23_v0 = vld [vmem:[%s542_s1] sm:$0xff]  ;;  %v24_v1 = vld [vmem:[%s542_s1 + $0x8] sm:$0xff]  ;;  %v25_v2 = vld [vmem:[%s542_s1 + $0x10] sm:$0xff] }
   0x2   :  { %v347_v3 = vpack.c.bf16 %v24_v1, %v23_v0  ;;  %v26_v4 = vld [vmem:[%s542_s1 + $0x18] sm:$0xff]  ;;  %v21_v5 = vld [vmem:[%s541_s0] sm:$0xff]  ;;  %v135_v8 = vld [vmem:[%s544_s3 + $0x8] sm:$0xff] }
   0x3   :  { %v351_v6 = vpack.c.bf16 %v26_v4, %v25_v2  ;;  %309 = vmatprep.mubr.msk.f32.mxu0 %vm34_vm0, %v21_v5  ;;  %v134_v7 = vld [vmem:[%s544_s3] sm:$0xff] }
   0x4   :  { %10 = vsyncpa [#allocation4], 0  ;;  %348 = vmatprep.subr.bf16.mxu0 %v347_v3  ;;  %v355_v9 = vpack.c.bf16 %v135_v8, %v134_v7  ;;  %v22_v10 = vld [vmem:[%s541_s0 + $0x8] sm:$0xff]  ;;  %v136_v11 = vld [vmem:[%s544_s3 + $0x10] sm:$0xff]  ;;  %s418_s11 = smov [#allocation3]  }
   0x5   :  { %350 = vmatpush3.bf16.msra.mxu0 %v347_v3  ;;  %v137_v12 = vld [vmem:[%s544_s3 + $0x18] sm:$0xff]  ;;  %v138_v14 = vld [vmem:[%s544_s3 + $0x20] sm:$0xff]  ;;  %v139_v15 = vld [vmem:[%s544_s3 + $0x28] sm:$0xff]  ;;  %s262_s12 = sshll.u32 %s418_s11, 4  ;;  %s263_s12 = int_to_ptr.vmem [resolvable:$true] %s262_s12 }
   0x6   :  { %352 = vmatprep.subr.bf16.mxu0 %v351_v6  ;;  %356 = vmatprep.subr.bf16.mxu1 %v355_v9  ;;  %v359_v13 = vpack.c.bf16 %v137_v12, %v136_v11  ;;  %v363_v16 = vpack.c.bf16 %v139_v15, %v138_v14  ;;  %v140_v17 = vld [vmem:[%s544_s3 + $0x30] sm:$0xff]  ;;  %v141_v18 = vld [vmem:[%s544_s3 + $0x38] sm:$0xff]  ;;  %v142_v20 = vld [vmem:[%s544_s3 + $0x40] sm:$0xff]  ;;  %s394_s13 = scalar_lea.vmem %s263_s12, 256  ;;  %p399_p1 = scmp.lt.s32.totalorder %s263_s12, %s263_s12 }
   0x7   :  { %358 = vmatpush3.bf16.msra.mxu1 %v355_v9  ;;  %v367_v19 = vpack.c.bf16 %v141_v18, %v140_v17  ;;  %v143_v21 = vld [vmem:[%s544_s3 + $0x48] sm:$0xff]  ;;  %v144_v22 = vld [vmem:[%s544_s3 + $0x50] sm:$0xff]  ;;  %v145_v24 = vld [vmem:[%s544_s3 + $0x58] sm:$0xff]  ;;  %p395_p0 = scmp.ne.s32.totalorder %s263_s12, %s394_s13  ;;  %p400_p2 = scmp.lt.s32.totalorder %s394_s13, %s394_s13 }
   0x8   :  { %360 = vmatprep.subr.bf16.mxu1 %v359_v13  ;;  %v371_v23 = vpack.c.bf16 %v143_v21, %v142_v20  ;;  %v375_v25 = vpack.c.bf16 %v145_v24, %v144_v22  ;;  %v146_v26 = vld [vmem:[%s544_s3 + $0x60] sm:$0xff]  ;;  %v147_v27 = vld [vmem:[%s544_s3 + $0x68] sm:$0xff]  ;;  %v148_v29 = vld [vmem:[%s544_s3 + $0x70] sm:$0xff] }
   0x9   :  { %354 = vmatpush3.bf16.msra.mxu0 %v351_v6  ;;  %v379_v28 = vpack.c.bf16 %v147_v27, %v146_v26  ;;  %v149_v30 = vld [vmem:[%s544_s3 + $0x78] sm:$0xff]  ;;  %v273_v32 = vld [vmem:[%s543_s2] ss:$0 sm:$0xff]  ;;  %p401_p3 = por %p400_p2, %p399_p1 }
   0xa   :  { %v383_v31 = vpack.c.bf16 %v149_v30, %v148_v29  ;;  %v276_v57 = vld [vmem:[%s545_s4] ss:$0 sm:$0xff] }
   0xb   :  { %362 = vmatpush3.bf16.msra.mxu1 %v359_v13  ;;  %p402_p4 = pnand %p401_p3, %p395_p0 }
   0xc   :  { %310 = vmatmul.mubr.msk.f32.vlgmr.msra.gmra.mrb[0].mxu0 %vm34_vm0, %v22_v10  ;;  %364 = vmatprep.subr.bf16.mxu1 %v363_v16 }
   0xf   :  { %366 = vmatpush3.bf16.msra.mxu1 %v363_v16 }
  0x10   :  { %368 = vmatprep.subr.bf16.mxu1 %v367_v19 }
  0x13   :  { %370 = vmatpush3.bf16.msra.mxu1 %v367_v19 }
  0x14   :  { %372 = vmatprep.subr.bf16.mxu1 %v371_v23 }
  0x17   :  { %374 = vmatpush3.bf16.msra.mxu1 %v371_v23 }
  0x18   :  { %376 = vmatprep.subr.bf16.mxu1 %v375_v25 }
  0x1b   :  { %378 = vmatpush3.bf16.msra.mxu1 %v375_v25 }
  0x1c   :  { %380 = vmatprep.subr.bf16.mxu1 %v379_v28 }
  0x1f   :  { %382 = vmatpush3.bf16.msra.mxu1 %v379_v28 }
  0x20   :  { %384 = vmatprep.subr.bf16.mxu1 %v383_v31 }
  0x23   :  { %386 = vmatpush3.bf16.msra.mxu1 %v383_v31 }
  0xdf   :  { %v311_v33 = vpop.f32.mrb[0].mxu0 }
  0xe0   :  { %v113_v34 = vadd.f32 %v311_v33, %v273_v32  ;;  %v107_v35 = vpop.f32.mrb[1].mxu0 }
  0xe1   :  { %v108_v36 = vadd.f32 %v273_v32, %v107_v35 }
  0xe2   :  { %v121_v37 = vmul.f32 0.044715, %v113_v34  ;;  %v119_v41 = vmul.f32 0.7978846, %v113_v34  ;;  %v117_v52 = vmul.f32 0.5, %v113_v34 }
  0xe3   :  { %v120_v38 = vmul.f32 0.044715, %v108_v36  ;;  %v118_v43 = vmul.f32 0.7978846, %v108_v36  ;;  %v116_v50 = vmul.f32 0.5, %v108_v36 }
  0xe4   :  { %v123_v39 = vmul.f32 %v121_v37, %v113_v34 }
  0xe5   :  { %v122_v40 = vmul.f32 %v120_v38, %v108_v36 }
  0xe6   :  { %v125_v42 = vadd.f32 1.0, %v123_v39 }
  0xe7   :  { %v124_v44 = vadd.f32 1.0, %v122_v40 }
  0xe8   :  { %v127_v45 = vmul.f32 %v125_v42, %v119_v41 }
  0xe9   :  { %v126_v46 = vmul.f32 %v124_v44, %v118_v43 }
  0xea   :  { %390 = vtanh.f32 %v127_v45 }
  0xeb   :  { %392 = vtanh.f32 %v126_v46 }
  0xf4   :  { %v391_v47 = vpop.eup %390 }
  0xf5   :  { %v393_v48 = vpop.eup %392  ;;  %v131_v49 = vadd.f32 1.0, %v391_v47 }
  0xf6   :  { %v130_v51 = vadd.f32 1.0, %v393_v48 }
  0xf7   :  { %v133_v54 = vmul.f32 %v131_v49, %v117_v52 }
  0xf8   :  { %v132_v53 = vmul.f32 %v130_v51, %v116_v50 }
  0xfa   :  { %344 = vmatprep.mubr.f32.mxu1 %v132_v53 }
  0xfb   :  { %345 = vmatmul.mubr.f32.vlgmr.msra.gmra.mrb[0].mxu1 %v133_v54 }
 0x1ce   :  { %v346_v55 = vpop.f32.mrb[0].mxu1 }
 0x1cf   :  { %230 = vst.msk [vmem:[#allocation2 + $0x8] sm:$0xff] %vm34_vm0, %v346_v55  ;;  %v216_v56 = vpop.f32.mrb[1].mxu1 }
 0x1d0   :  { %229 = vst.msk [vmem:[#allocation2] sm:$0xff] %vm34_vm0, %v216_v56 }
 0x1d6   :  { %v245_v58 = vld [vmem:[#allocation2 + $0x8] sm:$0xff] }
 0x1d7   :  { %v244_v59 = vld [vmem:[#allocation2] sm:$0xff]  ;;  %v254_v60 = vadd.f32 %v276_v57, %v245_v58 }
 0x1d8   :  { %v253_v61 = vadd.f32 %v276_v57, %v244_v59 }
 0x1d9   :  { %256 = vst.msk [vmem:[#allocation3 + $0x8] sm:$0xff] %vm34_vm0, %v254_v60 }
 0x1da   :  { %255 = vst.msk [vmem:[#allocation3] sm:$0xff] %vm34_vm0, %v253_v61 }
 0x1db   :  { %405 = shalt.err (!%p402_p4)
}
 0x1dc   :  { %s406_s15 = scalar_lea.hbm %s546_s5, 256 }
 0x1dd   :  { %p407_p5 = scmp.ne.s32.totalorder %s546_s5, %s406_s15  ;;  %p410_p6 = scmp.lt.u32.totalorder %s406_s15, %s546_s5 }
 0x1df   :  { %p412_p7 = pnand %p410_p6, %p407_p5 }
 0x1e1   :  { %415 = shalt.err (!%p412_p7)
}
 0x1e2   :  { %s419_s19 = smov 128   ;;  %s420_s20 = smov 8  }
 0x1e3   :  { %268 = dma.vmem_to_hbm [thread:$0]  %s263_s12, 256, %s546_s5, [#allocation4], %s419_s19, %s419_s19, %s420_s20  }
 0x1e4   :  { %416 = dma.done.wait [#allocation4], 256  }
 0x1e5   :  { %417 = vsyncadd [#allocation4], 4294967040 }
 0x1e6   :  { %272 = vsyncpa [#allocation4], 1 }

</bundles_post_ra>
